<compile_context>
chip_gen: v7x
topology: tpu7x:2x2x1
jax: 0.10.0
libtpu: 0.0.40
codegen_flags: <defaults>
</compile_context>

<pallas_src>
import jax
import jax.numpy as jnp
from jax.experimental import pallas as pl
from jax.experimental.pallas import tpu as pltpu

_EPS = 1e-5


def _pick_tile(d):
    """Largest lane-dense tile width that divides D (falls back to untiled)."""
    for t in (512, 256, 128):          # 512-wide f32 tiles already reach ~85% of HBM BW
        if d % t == 0:
            return t
    return d                            # D itself (full-extent block is always legal)


# --------------------------------------------------------------------------- #
# Call 1: encoder + decoder hidden.  Grid: K-reduction over input_dim tiles.  #
# --------------------------------------------------------------------------- #
def _encode_kernel(x_ref, w1_ref, g1_ref, be1_ref, w2_ref, b2_ref,
                   w3_ref, g3_ref, be3_ref,
                   z_ref, d_ref, acc_ref):
    k = pl.program_id(0)

    @pl.when(k == 0)
    def _():
        acc_ref[...] = jnp.zeros_like(acc_ref)

    # Partial x @ w1 for this feature tile (bf16 or f32 operands, f32 accumulate).
    acc_ref[...] += jnp.dot(x_ref[...], w1_ref[...],
                            preferred_element_type=jnp.float32)

    @pl.when(k == pl.num_programs(0) - 1)
    def _():
        h = acc_ref[...]
        # BatchNorm1d, training statistics.  (b1 is dropped: exactly cancelled
        # by the mean subtraction below.)
        mu = jnp.mean(h, axis=0, keepdims=True)
        var = jnp.mean((h - mu) * (h - mu), axis=0, keepdims=True)   # biased var
        h = (h - mu) * jax.lax.rsqrt(var + _EPS) * g1_ref[...] + be1_ref[...]
        h = jnp.maximum(h, 0.0)

        # encoder Linear(64, 16) -> z
        z = jnp.dot(h, w2_ref[...], preferred_element_type=jnp.float32) + b2_ref[...]
        z_ref[...] = z.astype(z_ref.dtype)

        # decoder Linear(16, 64) -> BN (b3 cancelled) -> ReLU -> d
        d = jnp.dot(z, w3_ref[...], preferred_element_type=jnp.float32)
        mu3 = jnp.mean(d, axis=0, keepdims=True)
        var3 = jnp.mean((d - mu3) * (d - mu3), axis=0, keepdims=True)
        d = (d - mu3) * jax.lax.rsqrt(var3 + _EPS) * g3_ref[...] + be3_ref[...]
        d = jnp.maximum(d, 0.0)
        d_ref[...] = d.astype(d_ref.dtype)


# --------------------------------------------------------------------------- #
# Call 2: decoder output.  Grid: N-split over input_dim output-column tiles.  #
# --------------------------------------------------------------------------- #
def _decode_kernel(d_ref, w4_ref, b4_ref, out_ref):
    out = jnp.dot(d_ref[...], w4_ref[...],
                  preferred_element_type=jnp.float32) + b4_ref[...]
    out_ref[...] = out.astype(out_ref.dtype)


def sae_forward(x, params, *, stream_dtype=jnp.float32):
    """x: (B, input_dim) float32.  Returns (output (B, input_dim) f32, z (B, 16) f32).

    stream_dtype controls the dtype of the HBM-bound streams (x, w1, w4, d);
    bf16 roughly halves HBM traffic and VMEM footprint while all accumulation
    and BatchNorm math stays f32.
    """
    B, D = x.shape
    tile_d = _pick_tile(D)
    n_tiles = D // tile_d

    sd = stream_dtype
    x_s = x.astype(sd)
    w1_s = params["w1"].astype(sd)
    w4_s = params["w4"].astype(sd)

    const = lambda i: (0, 0)   # small residents: DMA'd once, stay in VMEM

    # ---- call 1: encoder + decoder hidden (K-reduction over feature tiles) ----
    z, d = pl.pallas_call(
        _encode_kernel,
        out_shape=(jax.ShapeDtypeStruct((B, 16), jnp.float32),
                   jax.ShapeDtypeStruct((B, 64), sd)),
        grid_spec=pltpu.PrefetchScalarGridSpec(
            num_scalar_prefetch=0,
            grid=(n_tiles,),
            in_specs=[
                pl.BlockSpec((B, tile_d), lambda k: (0, k)),    # x tile (streamed)
                pl.BlockSpec((tile_d, 64), lambda k: (k, 0)),   # w1 tile (streamed)
                pl.BlockSpec((1, 64), const),                   # g1
                pl.BlockSpec((1, 64), const),                   # be1
                pl.BlockSpec((64, 16), const),                  # w2
                pl.BlockSpec((1, 16), const),                   # b2
                pl.BlockSpec((16, 64), const),                  # w3
                pl.BlockSpec((1, 64), const),                   # g3
                pl.BlockSpec((1, 64), const),                   # be3
            ],
            out_specs=[pl.BlockSpec((B, 16), const),            # z
                       pl.BlockSpec((B, 64), const)],           # d (decoder hidden)
            scratch_shapes=[pltpu.VMEM((B, 64), jnp.float32)],  # persistent accumulator
        ),
        compiler_params=pltpu.CompilerParams(
            dimension_semantics=("arbitrary",)),                # reduction axis
    )(x_s, w1_s, params["g1"], params["be1"], params["w2"], params["b2"],
      params["w3"], params["g3"], params["be3"])

    # ---- call 2: decoder output (N-split over feature tiles, lane-dense out) ----
    out = pl.pallas_call(
        _decode_kernel,
        out_shape=jax.ShapeDtypeStruct((B, D), jnp.float32),
        grid_spec=pltpu.PrefetchScalarGridSpec(
            num_scalar_prefetch=0,
            grid=(n_tiles,),
            in_specs=[
                pl.BlockSpec((B, 64), lambda n: (0, 0)),        # d resident
                pl.BlockSpec((64, tile_d), lambda n: (0, n)),   # w4 tile (streamed)
                pl.BlockSpec((1, tile_d), lambda n: (0, n)),    # b4 tile
            ],
            out_specs=pl.BlockSpec((B, tile_d), lambda n: (0, n)),
        ),
        compiler_params=pltpu.CompilerParams(
            dimension_semantics=("parallel",)),                 # v7x megacore sharding
    )(d, w4_s, params["b4"])

    return out, z


def init_params(key, input_dim):
    """Deterministic parameter init (shapes match the PyTorch module)."""
    ks = jax.random.split(key, 8)

    def lin(kw, kb, fan_in, fan_out):
        bound = 1.0 / jnp.sqrt(fan_in)
        w = jax.random.uniform(kw, (fan_in, fan_out), jnp.float32, -bound, bound)
        b = jax.random.uniform(kb, (1, fan_out), jnp.float32, -bound, bound)
        return w, b

    w1, b1 = lin(ks[0], ks[1], input_dim, 64)
    w2, b2 = lin(ks[2], ks[3], 64, 16)
    w3, b3 = lin(ks[4], ks[5], 16, 64)
    w4, b4 = lin(ks[6], ks[7], 64, input_dim)

    return dict(
        w1=w1, b1=b1, g1=jnp.ones((1, 64), jnp.float32), be1=jnp.zeros((1, 64), jnp.float32),
        w2=w2, b2=b2,
        w3=w3, b3=b3, g3=jnp.ones((1, 64), jnp.float32), be3=jnp.zeros((1, 64), jnp.float32),
        w4=w4, b4=b4,
    )


def _reference(x, p):
    """Pure-JAX f32 reference (keeps b1/b3 to validate the BN cancellation)."""
    h = x @ p["w1"] + p["b1"]
    mu = h.mean(0, keepdims=True)
    var = ((h - mu) ** 2).mean(0, keepdims=True)
    h = jnp.maximum((h - mu) / jnp.sqrt(var + _EPS) * p["g1"] + p["be1"], 0.0)
    z = h @ p["w2"] + p["b2"]
    d = z @ p["w3"] + p["b3"]
    mu3 = d.mean(0, keepdims=True)
    var3 = ((d - mu3) ** 2).mean(0, keepdims=True)
    d = jnp.maximum((d - mu3) / jnp.sqrt(var3 + _EPS) * p["g3"] + p["be3"], 0.0)
    out = d @ p["w4"] + p["b4"]
    return out, z


if __name__ == "__main__":
    key = jax.random.PRNGKey(0)
    k_x, k_p = jax.random.split(key)

    # Small but tiling-exercising shapes: input_dim=256 -> two 128-wide feature tiles.
    B, input_dim = 8, 256
    x = jax.random.normal(k_x, (B, input_dim), jnp.float32)
    params = init_params(k_p, input_dim)

    ref_out, ref_z = _reference(x, params)

    # f32 streaming path (tight tolerance).
    out, z = jax.block_until_ready(sae_forward(x, params))
    assert out.shape == (B, input_dim) and z.shape == (B, 16)
    assert jnp.allclose(out, ref_out, atol=1e-4, rtol=1e-4)
    assert jnp.allclose(z, ref_z, atol=1e-4, rtol=1e-4)

    # bf16 streaming path (HBM-bound tensors halved; loose tolerance vs f32 ref).
    out_bf, z_bf = jax.block_until_ready(
        sae_forward(x, params, stream_dtype=jnp.bfloat16))
    assert jnp.allclose(out_bf, ref_out, atol=1e-1, rtol=1e-1)
    assert jnp.allclose(z_bf, ref_z, atol=1e-1, rtol=1e-1)

    print("KERNEL_OK")
</pallas_src>

<mosaic_0001>
module attributes {stable_mosaic.version = 11 : i64} {
  func.func @_encode_kernel(%arg0: i32, %arg1: memref<8x256xf32, #tpu.memory_space<vmem>>, %arg2: memref<256x64xf32, #tpu.memory_space<vmem>>, %arg3: memref<1x64xf32, #tpu.memory_space<vmem>>, %arg4: memref<1x64xf32, #tpu.memory_space<vmem>>, %arg5: memref<64x16xf32, #tpu.memory_space<vmem>>, %arg6: memref<1x16xf32, #tpu.memory_space<vmem>>, %arg7: memref<16x64xf32, #tpu.memory_space<vmem>>, %arg8: memref<1x64xf32, #tpu.memory_space<vmem>>, %arg9: memref<1x64xf32, #tpu.memory_space<vmem>>, %arg10: memref<8x16xf32, #tpu.memory_space<vmem>>, %arg11: memref<8x64xf32, #tpu.memory_space<vmem>>, %arg12: memref<8x64xf32, #tpu.memory_space<vmem>>) attributes {dimension_semantics = [#tpu.dimension_semantics<arbitrary>], iteration_bounds = array<i64: 1>, scalar_prefetch = 0 : i64, scratch_operands = 1 : i64, tpu.core_type = #tpu.core_type<tc>, window_params = [{transform_indices = @transform_0, window_bounds = array<i64: 8, 256>}, {transform_indices = @transform_1, window_bounds = array<i64: 256, 64>}, {pipeline_mode = #tpu.pipeline_mode<synchronous>, transform_indices = @transform_2, window_bounds = array<i64: 1, 64>}, {pipeline_mode = #tpu.pipeline_mode<synchronous>, transform_indices = @transform_3, window_bounds = array<i64: 1, 64>}, {pipeline_mode = #tpu.pipeline_mode<synchronous>, transform_indices = @transform_4, window_bounds = array<i64: 64, 16>}, {pipeline_mode = #tpu.pipeline_mode<synchronous>, transform_indices = @transform_5, window_bounds = array<i64: 1, 16>}, {pipeline_mode = #tpu.pipeline_mode<synchronous>, transform_indices = @transform_6, window_bounds = array<i64: 16, 64>}, {pipeline_mode = #tpu.pipeline_mode<synchronous>, transform_indices = @transform_7, window_bounds = array<i64: 1, 64>}, {pipeline_mode = #tpu.pipeline_mode<synchronous>, transform_indices = @transform_8, window_bounds = array<i64: 1, 64>}, {pipeline_mode = #tpu.pipeline_mode<synchronous>, transform_indices = @transform_9, window_bounds = array<i64: 8, 16>}, {pipeline_mode = #tpu.pipeline_mode<synchronous>, transform_indices = @transform_10, window_bounds = array<i64: 8, 64>}]} {
    %c0_i32 = arith.constant 0 : i32
    %0 = arith.cmpi eq, %arg0, %c0_i32 : i32
    %1 = arith.extui %0 : i1 to i32
    %c0_i32_0 = arith.constant 0 : i32
    %2 = arith.cmpi ne, %1, %c0_i32_0 : i32
    scf.if %2 {
      %cst_10 = arith.constant 0.000000e+00 : f32
      %12 = vector.broadcast %cst_10 : f32 to vector<8x64xf32>
      %c0_11 = arith.constant 0 : index
      %c0_12 = arith.constant 0 : index
      %13 = vector.load %arg12[%c0_11, %c0_12] : memref<8x64xf32, #tpu.memory_space<vmem>>, vector<8x64xf32>
      tpu.vector_store %arg12[%c0_11, %c0_12], %12 {strides = array<i32>} : memref<8x64xf32, #tpu.memory_space<vmem>>, vector<8x64xf32>,
    } else {
    }
    %c0 = arith.constant 0 : index
    %c0_1 = arith.constant 0 : index
    %3 = vector.load %arg12[%c0, %c0_1] : memref<8x64xf32, #tpu.memory_space<vmem>>, vector<8x64xf32>
    %c0_2 = arith.constant 0 : index
    %c0_3 = arith.constant 0 : index
    %4 = vector.load %arg1[%c0_2, %c0_3] : memref<8x256xf32, #tpu.memory_space<vmem>>, vector<8x256xf32>
    %c0_4 = arith.constant 0 : index
    %c0_5 = arith.constant 0 : index
    %5 = vector.load %arg2[%c0_4, %c0_5] : memref<256x64xf32, #tpu.memory_space<vmem>>, vector<256x64xf32>
    %cst = arith.constant dense<0.000000e+00> : vector<8x64xf32>
    %6 = tpu.matmul %4, %5, %cst {dimension_numbers = #tpu.dot_dimension_numbers<[1], [0], [0], [1], [0, 0, 1, 1], [], []>} : vector<8x256xf32>, vector<256x64xf32>, vector<8x64xf32> -> vector<8x64xf32>
    %7 = arith.addf %3, %6 : vector<8x64xf32>
    %c0_6 = arith.constant 0 : index
    %c0_7 = arith.constant 0 : index
    %8 = vector.load %arg12[%c0_6, %c0_7] : memref<8x64xf32, #tpu.memory_space<vmem>>, vector<8x64xf32>
    tpu.vector_store %arg12[%c0_6, %c0_7], %7 {strides = array<i32>} : memref<8x64xf32, #tpu.memory_space<vmem>>, vector<8x64xf32>,
    %c0_i32_8 = arith.constant 0 : i32
    %9 = arith.cmpi eq, %arg0, %c0_i32_8 : i32
    %10 = arith.extui %9 : i1 to i32
    %c0_i32_9 = arith.constant 0 : i32
    %11 = arith.cmpi ne, %10, %c0_i32_9 : i32
    scf.if %11 {
      %c0_10 = arith.constant 0 : index
      %c0_11 = arith.constant 0 : index
      %12 = vector.load %arg12[%c0_10, %c0_11] : memref<8x64xf32, #tpu.memory_space<vmem>>, vector<8x64xf32>
      %cst_12 = arith.constant dense<0.000000e+00> : vector<64xf32>
      %13 = vector.multi_reduction <add>, %12, %cst_12 [0] : vector<8x64xf32> to vector<64xf32>
      %14 = vector.shape_cast %13 : vector<64xf32> to vector<1x64xf32>
      %cst_13 = arith.constant 8.000000e+00 : f32
      %15 = vector.broadcast %cst_13 : f32 to vector<1x64xf32>
      %16 = arith.divf %14, %15 : vector<1x64xf32>
      %17 = vector.broadcast %16 : vector<1x64xf32> to vector<8x64xf32>
      %18 = arith.subf %12, %17 : vector<8x64xf32>
      %19 = vector.broadcast %16 : vector<1x64xf32> to vector<8x64xf32>
      %20 = arith.subf %12, %19 : vector<8x64xf32>
      %21 = arith.mulf %18, %20 : vector<8x64xf32>
      %cst_14 = arith.constant dense<0.000000e+00> : vector<64xf32>
      %22 = vector.multi_reduction <add>, %21, %cst_14 [0] : vector<8x64xf32> to vector<64xf32>
      %23 = vector.shape_cast %22 : vector<64xf32> to vector<1x64xf32>
      %cst_15 = arith.constant 8.000000e+00 : f32
      %24 = vector.broadcast %cst_15 : f32 to vector<1x64xf32>
      %25 = arith.divf %23, %24 : vector<1x64xf32>
      %26 = vector.broadcast %16 : vector<1x64xf32> to vector<8x64xf32>
      %27 = arith.subf %12, %26 : vector<8x64xf32>
      %cst_16 = arith.constant 9.99999974E-6 : f32
      %28 = vector.broadcast %cst_16 : f32 to vector<1x64xf32>
      %29 = arith.addf %25, %28 : vector<1x64xf32>
      %30 = math.rsqrt %29 : vector<1x64xf32>
      %31 = vector.broadcast %30 : vector<1x64xf32> to vector<8x64xf32>
      %32 = arith.mulf %27, %31 : vector<8x64xf32>
      %c0_17 = arith.constant 0 : index
      %c0_18 = arith.constant 0 : index
      %33 = vector.load %arg3[%c0_17, %c0_18] : memref<1x64xf32, #tpu.memory_space<vmem>>, vector<1x64xf32>
      %34 = vector.broadcast %33 : vector<1x64xf32> to vector<8x64xf32>
      %35 = arith.mulf %32, %34 : vector<8x64xf32>
      %c0_19 = arith.constant 0 : index
      %c0_20 = arith.constant 0 : index
      %36 = vector.load %arg4[%c0_19, %c0_20] : memref<1x64xf32, #tpu.memory_space<vmem>>, vector<1x64xf32>
      %37 = vector.broadcast %36 : vector<1x64xf32> to vector<8x64xf32>
      %38 = arith.addf %35, %37 : vector<8x64xf32>
      %cst_21 = arith.constant 0.000000e+00 : f32
      %39 = vector.broadcast %cst_21 : f32 to vector<8x64xf32>
      %40 = arith.maximumf %38, %39 : vector<8x64xf32>
      %c0_22 = arith.constant 0 : index
      %c0_23 = arith.constant 0 : index
      %41 = vector.load %arg5[%c0_22, %c0_23] : memref<64x16xf32, #tpu.memory_space<vmem>>, vector<64x16xf32>
      %cst_24 = arith.constant dense<0.000000e+00> : vector<8x16xf32>
      %42 = tpu.matmul %40, %41, %cst_24 {dimension_numbers = #tpu.dot_dimension_numbers<[1], [0], [0], [1], [0, 0, 1, 1], [], []>} : vector<8x64xf32>, vector<64x16xf32>, vector<8x16xf32> -> vector<8x16xf32>
      %c0_25 = arith.constant 0 : index
      %c0_26 = arith.constant 0 : index
      %43 = vector.load %arg6[%c0_25, %c0_26] : memref<1x16xf32, #tpu.memory_space<vmem>>, vector<1x16xf32>
      %44 = vector.broadcast %43 : vector<1x16xf32> to vector<8x16xf32>
      %45 = arith.addf %42, %44 : vector<8x16xf32>
      %c0_27 = arith.constant 0 : index
      %c0_28 = arith.constant 0 : index
      %46 = vector.load %arg10[%c0_27, %c0_28] : memref<8x16xf32, #tpu.memory_space<vmem>>, vector<8x16xf32>
      tpu.vector_store %arg10[%c0_27, %c0_28], %45 {strides = array<i32>} : memref<8x16xf32, #tpu.memory_space<vmem>>, vector<8x16xf32>,
      %c0_29 = arith.constant 0 : index
      %c0_30 = arith.constant 0 : index
      %47 = vector.load %arg7[%c0_29, %c0_30] : memref<16x64xf32, #tpu.memory_space<vmem>>, vector<16x64xf32>
      %cst_31 = arith.constant dense<0.000000e+00> : vector<8x64xf32>
      %48 = tpu.matmul %45, %47, %cst_31 {dimension_numbers = #tpu.dot_dimension_numbers<[1], [0], [0], [1], [0, 0, 1, 1], [], []>} : vector<8x16xf32>, vector<16x64xf32>, vector<8x64xf32> -> vector<8x64xf32>
      %cst_32 = arith.constant dense<0.000000e+00> : vector<64xf32>
      %49 = vector.multi_reduction <add>, %48, %cst_32 [0] : vector<8x64xf32> to vector<64xf32>
      %50 = vector.shape_cast %49 : vector<64xf32> to vector<1x64xf32>
      %cst_33 = arith.constant 8.000000e+00 : f32
      %51 = vector.broadcast %cst_33 : f32 to vector<1x64xf32>
      %52 = arith.divf %50, %51 : vector<1x64xf32>
      %53 = vector.broadcast %52 : vector<1x64xf32> to vector<8x64xf32>
      %54 = arith.subf %48, %53 : vector<8x64xf32>
      %55 = vector.broadcast %52 : vector<1x64xf32> to vector<8x64xf32>
      %56 = arith.subf %48, %55 : vector<8x64xf32>
      %57 = arith.mulf %54, %56 : vector<8x64xf32>
      %cst_34 = arith.constant dense<0.000000e+00> : vector<64xf32>
      %58 = vector.multi_reduction <add>, %57, %cst_34 [0] : vector<8x64xf32> to vector<64xf32>
      %59 = vector.shape_cast %58 : vector<64xf32> to vector<1x64xf32>
      %cst_35 = arith.constant 8.000000e+00 : f32
      %60 = vector.broadcast %cst_35 : f32 to vector<1x64xf32>
      %61 = arith.divf %59, %60 : vector<1x64xf32>
      %62 = vector.broadcast %52 : vector<1x64xf32> to vector<8x64xf32>
      %63 = arith.subf %48, %62 : vector<8x64xf32>
      %cst_36 = arith.constant 9.99999974E-6 : f32
      %64 = vector.broadcast %cst_36 : f32 to vector<1x64xf32>
      %65 = arith.addf %61, %64 : vector<1x64xf32>
      %66 = math.rsqrt %65 : vector<1x64xf32>
      %67 = vector.broadcast %66 : vector<1x64xf32> to vector<8x64xf32>
      %68 = arith.mulf %63, %67 : vector<8x64xf32>
      %c0_37 = arith.constant 0 : index
      %c0_38 = arith.constant 0 : index
      %69 = vector.load %arg8[%c0_37, %c0_38] : memref<1x64xf32, #tpu.memory_space<vmem>>, vector<1x64xf32>
      %70 = vector.broadcast %69 : vector<1x64xf32> to vector<8x64xf32>
      %71 = arith.mulf %68, %70 : vector<8x64xf32>
      %c0_39 = arith.constant 0 : index
      %c0_40 = arith.constant 0 : index
      %72 = vector.load %arg9[%c0_39, %c0_40] : memref<1x64xf32, #tpu.memory_space<vmem>>, vector<1x64xf32>
      %73 = vector.broadcast %72 : vector<1x64xf32> to vector<8x64xf32>
      %74 = arith.addf %71, %73 : vector<8x64xf32>
      %cst_41 = arith.constant 0.000000e+00 : f32
      %75 = vector.broadcast %cst_41 : f32 to vector<8x64xf32>
      %76 = arith.maximumf %74, %75 : vector<8x64xf32>
      %c0_42 = arith.constant 0 : index
      %c0_43 = arith.constant 0 : index
      %77 = vector.load %arg11[%c0_42, %c0_43] : memref<8x64xf32, #tpu.memory_space<vmem>>, vector<8x64xf32>
      tpu.vector_store %arg11[%c0_42, %c0_43], %76 {strides = array<i32>} : memref<8x64xf32, #tpu.memory_space<vmem>>, vector<8x64xf32>,
    } else {
    }
    return
  }
  func.func @transform_0(%arg0: i32) -> (i32, i32) {
    %c0_i32 = arith.constant 0 : i32
    %c0_i32_0 = arith.constant 0 : i32
    return %c0_i32, %arg0 : i32, i32
  }
  func.func @transform_1(%arg0: i32) -> (i32, i32) {
    %c0_i32 = arith.constant 0 : i32
    %c0_i32_0 = arith.constant 0 : i32
    return %arg0, %c0_i32 : i32, i32
  }
  func.func @transform_2(%arg0: i32) -> (i32, i32) {
    %c0_i32 = arith.constant 0 : i32
    %c0_i32_0 = arith.constant 0 : i32
    %c0_i32_1 = arith.constant 0 : i32
    return %c0_i32, %c0_i32_0 : i32, i32
  }
  func.func @transform_3(%arg0: i32) -> (i32, i32) {
    %c0_i32 = arith.constant 0 : i32
    %c0_i32_0 = arith.constant 0 : i32
    %c0_i32_1 = arith.constant 0 : i32
    return %c0_i32, %c0_i32_0 : i32, i32
  }
  func.func @transform_4(%arg0: i32) -> (i32, i32) {
    %c0_i32 = arith.constant 0 : i32
    %c0_i32_0 = arith.constant 0 : i32
    %c0_i32_1 = arith.constant 0 : i32
    return %c0_i32, %c0_i32_0 : i32, i32
  }
  func.func @transform_5(%arg0: i32) -> (i32, i32) {
    %c0_i32 = arith.constant 0 : i32
    %c0_i32_0 = arith.constant 0 : i32
    %c0_i32_1 = arith.constant 0 : i32
    return %c0_i32, %c0_i32_0 : i32, i32
  }
  func.func @transform_6(%arg0: i32) -> (i32, i32) {
    %c0_i32 = arith.constant 0 : i32
    %c0_i32_0 = arith.constant 0 : i32
    %c0_i32_1 = arith.constant 0 : i32
    return %c0_i32, %c0_i32_0 : i32, i32
  }
  func.func @transform_7(%arg0: i32) -> (i32, i32) {
    %c0_i32 = arith.constant 0 : i32
    %c0_i32_0 = arith.constant 0 : i32
    %c0_i32_1 = arith.constant 0 : i32
    return %c0_i32, %c0_i32_0 : i32, i32
  }
  func.func @transform_8(%arg0: i32) -> (i32, i32) {
    %c0_i32 = arith.constant 0 : i32
    %c0_i32_0 = arith.constant 0 : i32
    %c0_i32_1 = arith.constant 0 : i32
    return %c0_i32, %c0_i32_0 : i32, i32
  }
  func.func @transform_9(%arg0: i32) -> (i32, i32) {
    %c0_i32 = arith.constant 0 : i32
    %c0_i32_0 = arith.constant 0 : i32
    %c0_i32_1 = arith.constant 0 : i32
    return %c0_i32, %c0_i32_0 : i32, i32
  }
  func.func @transform_10(%arg0: i32) -> (i32, i32) {
    %c0_i32 = arith.constant 0 : i32
    %c0_i32_0 = arith.constant 0 : i32
    %c0_i32_1 = arith.constant 0 : i32
    return %c0_i32, %c0_i32_0 : i32, i32
  }
}

</mosaic_0001>

<bundles_post_ra>
// kernel: tpu_custom_call.1
= control target key start
LH: loop header
LB: loop body
LE: loop exit
PB: predicated region body
PF: predicated region fallthrough
CT: control target
= control target key end

     0   :  { %16 = vsyncpa [#allocation4], 0  ;;  %s853_s0 = inlined_call_operand.vmem [shape: f32[8,256], index: 0, kind: input, shape index: {}]   ;;  %s854_s1 = inlined_call_operand.vmem [shape: f32[256,64], index: 1, kind: input, shape index: {}]   ;;  %s855_s2 = inlined_call_operand.vmem [shape: f32[1,64], index: 2, kind: input, shape index: {}]   ;;  %s856_s3 = inlined_call_operand.vmem [shape: f32[1,64], index: 3, kind: input, shape index: {}]   ;;  %s857_s4 = inlined_call_operand.vmem [shape: f32[64,16], index: 4, kind: input, shape index: {}]   ;;  %s858_s5 = inlined_call_operand.vmem [shape: f32[1,16], index: 5, kind: input, shape index: {}]   ;;  %s859_s6 = inlined_call_operand.vmem [shape: f32[16,64], index: 6, kind: input, shape index: {}]   ;;  %s860_s7 = inlined_call_operand.vmem [shape: f32[1,64], index: 7, kind: input, shape index: {}]   ;;  %s861_s8 = inlined_call_operand.vmem [shape: f32[1,64], index: 8, kind: input, shape index: {}]   ;;  %s862_s9 = inlined_call_operand.hbm [shape: f32[8,16], index: 9, kind: output, shape index: {0}]   ;;  %s863_s10 = inlined_call_operand.hbm [shape: f32[8,64], index: 10, kind: output, shape index: {1}]  }
   0x1   :  { %v61_v0 = vld [vmem:[%s854_s1 + $0x80] sm:$0xff]  ;;  %v62_v1 = vld [vmem:[%s854_s1 + $0x88] sm:$0xff]  ;;  %v63_v5 = vld [vmem:[%s854_s1 + $0x90] sm:$0xff] }
   0x2   :  { %v45_v2 = vld [vmem:[%s854_s1] sm:$0xff]  ;;  %v505_v3 = vpack.c.bf16 %v62_v1, %v61_v0  ;;  %v46_v4 = vld [vmem:[%s854_s1 + $0x8] sm:$0xff]  ;;  %v64_v6 = vld [vmem:[%s854_s1 + $0x98] sm:$0xff] }
   0x3   :  { %v507_v7 = vpack.c.bf16 %v46_v4, %v45_v2  ;;  %v509_v8 = vpack.c.bf16 %v64_v6, %v63_v5  ;;  %v47_v9 = vld [vmem:[%s854_s1 + $0x10] sm:$0xff]  ;;  %v48_v10 = vld [vmem:[%s854_s1 + $0x18] sm:$0xff]  ;;  %v65_v11 = vld [vmem:[%s854_s1 + $0xa0] sm:$0xff] }
   0x4   :  { %506 = vmatprep.subr.bf16.mxu0 %v505_v3  ;;  %v66_v12 = vld [vmem:[%s854_s1 + $0xa8] sm:$0xff]  ;;  %v511_v13 = vpack.c.bf16 %v48_v10, %v47_v9  ;;  %v49_v15 = vld [vmem:[%s854_s1 + $0x20] sm:$0xff]  ;;  %v67_v17 = vld [vmem:[%s854_s1 + $0xb0] sm:$0xff] }
   0x5   :  { %508 = vmatpush3.bf16.msra.mxu0 %v507_v7  ;;  %v513_v14 = vpack.c.bf16 %v66_v12, %v65_v11  ;;  %v50_v16 = vld [vmem:[%s854_s1 + $0x28] sm:$0xff]  ;;  %v68_v18 = vld [vmem:[%s854_s1 + $0xb8] sm:$0xff]  ;;  %v51_v21 = vld [vmem:[%s854_s1 + $0x30] sm:$0xff] }
   0x6   :  { %510 = vmatprep.subr.bf16.mxu0 %v509_v8  ;;  %v515_v19 = vpack.c.bf16 %v50_v16, %v49_v15  ;;  %v517_v20 = vpack.c.bf16 %v68_v18, %v67_v17  ;;  %v52_v22 = vld [vmem:[%s854_s1 + $0x38] sm:$0xff]  ;;  %v69_v23 = vld [vmem:[%s854_s1 + $0xc0] sm:$0xff]  ;;  %v70_v24 = vld [vmem:[%s854_s1 + $0xc8] sm:$0xff] }
   0x7   :  { %v44_v25 = vld [vmem:[%s853_s0 + $0x8] sm:$0xff] }
   0x8   :  { %141 = vmatprep.mubr.f32.mxu0 %v44_v25 }
   0x9   :  { %512 = vmatpush3.bf16.msra.mxu0 %v511_v13 }
   0xa   :  { %514 = vmatprep.subr.bf16.mxu0 %v513_v14 }
   0xb   :  { %17 = vsyncpa [#allocation6], 0  ;;  %v519_v26 = vpack.c.bf16 %v52_v22, %v51_v21  ;;  %v521_v27 = vpack.c.bf16 %v70_v24, %v69_v23  ;;  %v53_v28 = vld [vmem:[%s854_s1 + $0x40] sm:$0xff]  ;;  %v54_v29 = vld [vmem:[%s854_s1 + $0x48] sm:$0xff]  ;;  %vm40_vm0 = vcmask 523264   ;;  %v609_v50 = vmov 0.0  }
   0xc   :  { %v71_v30 = vld [vmem:[%s854_s1 + $0xd0] sm:$0xff]  ;;  %v72_v31 = vld [vmem:[%s854_s1 + $0xd8] sm:$0xff]  ;;  %v523_v32 = vpack.c.bf16 %v54_v29, %v53_v28  ;;  %v73_v36 = vld [vmem:[%s854_s1 + $0xe0] sm:$0xff]  ;;  %41 = vst.msk [vmem:[#allocation2] sm:$0xff] %vm40_vm0, %v609_v50  ;;  %v610_v54 = vmov 0.0|0.0   ;;  %vm611_vm1 = vmmov 0  }
   0xd   :  { %516 = vmatpush3.bf16.msra.mxu0 %v515_v19  ;;  %v525_v33 = vpack.c.bf16 %v72_v31, %v71_v30  ;;  %v55_v34 = vld [vmem:[%s854_s1 + $0x50] sm:$0xff]  ;;  %v56_v35 = vld [vmem:[%s854_s1 + $0x58] sm:$0xff]  ;;  %v74_v37 = vld [vmem:[%s854_s1 + $0xe8] sm:$0xff]  ;;  %537 = vmatprep.subr.bf16.mxu1 %v610_v54  ;;  %vm281_vm2 = vcmask 130048  }
   0xe   :  { %518 = vmatprep.subr.bf16.mxu0 %v517_v20  ;;  %v527_v38 = vpack.c.bf16 %v56_v35, %v55_v34  ;;  %v529_v39 = vpack.c.bf16 %v74_v37, %v73_v36  ;;  %v57_v40 = vld [vmem:[%s854_s1 + $0x60] sm:$0xff]  ;;  %v58_v41 = vld [vmem:[%s854_s1 + $0x68] sm:$0xff]  ;;  %v75_v42 = vld [vmem:[%s854_s1 + $0xf0] sm:$0xff]  ;;  %495 = vmatprep.mubr.msk.f32.mxu1 %vm611_vm1, %v609_v50 }
   0xf   :  { %v76_v43 = vld [vmem:[%s854_s1 + $0xf8] sm:$0xff]  ;;  %v531_v44 = vpack.c.bf16 %v58_v41, %v57_v40  ;;  %v59_v46 = vld [vmem:[%s854_s1 + $0x70] sm:$0xff]  ;;  %v43_v49 = vld [vmem:[%s853_s0] sm:$0xff] }
  0x10   :  { %v533_v45 = vpack.c.bf16 %v76_v43, %v75_v42  ;;  %v60_v47 = vld [vmem:[%s854_s1 + $0x78] sm:$0xff]  ;;  %v193_v51 = vld [vmem:[%s857_s4] sm:$0xff]  ;;  %v194_v52 = vld [vmem:[%s857_s4 + $0x8] sm:$0xff] }
  0x11   :  { %520 = vmatpush3.bf16.msra.mxu0 %v519_v26  ;;  %v535_v48 = vpack.c.bf16 %v60_v47, %v59_v46  ;;  %v195_v53 = vld [vmem:[%s857_s4 + $0x10] sm:$0xff]  ;;  %v538_v55 = vpack.c.bf16 %v194_v52, %v193_v51  ;;  %v196_v56 = vld [vmem:[%s857_s4 + $0x18] sm:$0xff]  ;;  %v197_v58 = vld [vmem:[%s857_s4 + $0x20] sm:$0xff] }
  0x12   :  { %522 = vmatprep.subr.bf16.mxu0 %v521_v27  ;;  %v541_v57 = vpack.c.bf16 %v196_v56, %v195_v53  ;;  %v198_v59 = vld [vmem:[%s857_s4 + $0x28] sm:$0xff]  ;;  %v199_v61 = vld [vmem:[%s857_s4 + $0x30] sm:$0xff]  ;;  %v200_v62 = vld [vmem:[%s857_s4 + $0x38] sm:$0xff] }
  0x13   :  { %539 = vmatpush3.bf16.msra.mxu1 %v538_v55  ;;  %v544_v60 = vpack.c.bf16 %v198_v59, %v197_v58  ;;  %v547_v63 = vpack.c.bf16 %v200_v62, %v199_v61  ;;  %v42_v2 = vld [vmem:[#allocation2] sm:$0xff]  ;;  %v284_v31 = vld [vmem:[%s859_s6 + $0x8] sm:$0xff] }
  0x14   :  { %540 = vmatprep.subr.bf16.mxu1 %v610_v54  ;;  %v425_v26 = vld [vmem:[%s855_s2] ss:$0 sm:$0xff] }
  0x15   :  { %524 = vmatpush3.bf16.msra.mxu0 %v523_v32  ;;  %v426_v28 = vld [vmem:[%s856_s3] ss:$0 sm:$0xff] }
  0x16   :  { %526 = vmatprep.subr.bf16.mxu0 %v525_v33  ;;  %v283_v30 = vld [vmem:[%s859_s6] sm:$0xff]  ;;  %s612_s6 = smov [#allocation3]  }
  0x17   :  { %542 = vmatpush3.bf16.msra.mxu1 %v541_v57  ;;  %v550_v33 = vpack.c.bf16 %v284_v31, %v283_v30  ;;  %v427_v35 = vld [vmem:[%s858_s5] ss:$0 sm:$0xff]  ;;  %s403_s22 = sshll.u32 %s612_s6, 4  ;;  %s404_s22 = int_to_ptr.vmem [resolvable:$true] %s403_s22 }
  0x18   :  { %543 = vmatprep.subr.bf16.mxu1 %v610_v54  ;;  %s561_s23 = scalar_lea.vmem %s404_s22, 128  ;;  %p566_p1 = scmp.lt.s32.totalorder %s404_s22, %s404_s22 }
  0x19   :  { %528 = vmatpush3.bf16.msra.mxu0 %v527_v38  ;;  %p562_p0 = scmp.ne.s32.totalorder %s404_s22, %s561_s23  ;;  %p567_p2 = scmp.lt.s32.totalorder %s561_s23, %s561_s23 }
  0x1a   :  { %530 = vmatprep.subr.bf16.mxu0 %v529_v39 }
  0x1b   :  { %545 = vmatpush3.bf16.msra.mxu1 %v544_v60  ;;  %p568_p3 = por %p567_p2, %p566_p1 }
  0x1c   :  { %546 = vmatprep.subr.bf16.mxu1 %v610_v54 }
  0x1d   :  { %532 = vmatpush3.bf16.msra.mxu0 %v531_v44  ;;  %p569_p4 = pnand %p568_p3, %p562_p0 }
  0x1e   :  { %534 = vmatprep.subr.bf16.mxu0 %v533_v45 }
  0x1f   :  { %548 = vmatpush3.bf16.msra.mxu1 %v547_v63 }
  0x20   :  { %549 = vmatprep.subr.bf16.mxu1 %v610_v54 }
  0x21   :  { %536 = vmatpush3.bf16.msra.mxu0 %v535_v48 }
  0x24   :  { %142 = vmatmul.mubr.f32.vlgmr.msra.gmra.mrb[0].mxu0 %v43_v49 }
  0xf7   :  { %v464_v0 = vpop.f32.mrb[0].mxu0 }
  0xf8   :  { %v465_v1 = vpop.f32.mrb[1].mxu0 }
  0xf9   :  { %v466_v3 = vadd.f32 %v465_v1, %v464_v0 }
  0xfb   :  { %v147_v4 = vadd.f32 %v466_v3, %v42_v2 }
  0xfd   :  { %149 = vst.msk [vmem:[#allocation2] sm:$0xff] %vm40_vm0, %v147_v4 }
 0x104   :  { %v153_v5 = vld [vmem:[#allocation2] sm:$0xff] }
 0x105   :  { %v154_v6 = vsel %vm40_vm0, %v153_v5, 0.0 }
 0x106   :  { %v155_v7 = vrot.slane %v154_v6, 4 }
 0x108   :  { %v156_v8 = vadd.f32 %v155_v7, %v154_v6 }
 0x10a   :  { %v157_v9 = vrot.slane %v156_v8, 2 }
 0x10c   :  { %v158_v10 = vadd.f32 %v157_v9, %v156_v8 }
 0x10e   :  { %v159_v11 = vrot.slane %v158_v10, 1 }
 0x110   :  { %v160_v12 = vadd.f32 %v159_v11, %v158_v10 }
 0x112   :  { %v162_v13 = vmul.f32 0.125, %v160_v12 }
 0x114   :  { %v163_v14 = vsub.f32 %v153_v5, %v162_v13 }
 0x116   :  { %v164_v15 = vmul.f32 %v163_v14, %v163_v14 }
 0x118   :  { %v165_v16 = vsel %vm40_vm0, %v164_v15, 0.0 }
 0x119   :  { %v166_v17 = vrot.slane %v165_v16, 4 }
 0x11b   :  { %v167_v18 = vadd.f32 %v166_v17, %v165_v16 }
 0x11d   :  { %v168_v19 = vrot.slane %v167_v18, 2 }
 0x11f   :  { %v169_v20 = vadd.f32 %v168_v19, %v167_v18 }
 0x121   :  { %v170_v21 = vrot.slane %v169_v20, 1 }
 0x123   :  { %v171_v22 = vadd.f32 %v170_v21, %v169_v20 }
 0x125   :  { %v172_v23 = vmul.f32 0.125, %v171_v22 }
 0x127   :  { %v173_v24 = vadd.f32 1e-05, %v172_v23 }
 0x129   :  { %557 = vrsqrt.f32 %v173_v24 }
 0x133   :  { %v558_v25 = vpop.eup %557 }
 0x134   :  { %v175_v27 = vmul.f32 %v558_v25, %v163_v14 }
 0x136   :  { %v183_v29 = vmul.f32 %v425_v26, %v175_v27 }
 0x138   :  { %v191_v32 = vadd.f32 %v426_v28, %v183_v29 }
 0x13a   :  { %v192_v34 = vmax.f32 %v191_v32, 0.0 }
 0x13c   :  { %496 = vmatmul.mubr.msk.f32.vlgmr.msra.gmra.mrb[0].mxu1 %vm40_vm0, %v192_v34 }
 0x13d   :  { %551 = vmatpush3.bf16.msra.mxu1 %v550_v33  ;;  %502 = vmatprep.mubr.msk.f32.mxu1 %vm611_vm1, %v609_v50 }
 0x20f   :  { %v277_v36 = vpop.f32.mrb[0].mxu1 }
 0x210   :  { %v278_v37 = vadd.f32 %v427_v35, %v277_v36  ;;  %v497_v38 = vpop.f32.mrb[1].mxu1 }
 0x212   :  { %503 = vmatmul.mubr.msk.f32.vlgmr.msra.gmra.mrb[2].mxu1 %vm281_vm2, %v278_v37  ;;  %282 = vst.msk [vmem:[#allocation3] sm:$0xff] %vm281_vm2, %v278_v37 }
 0x213   :  { %572 = shalt.err (!%p569_p4)
}
 0x214   :  { %s573_s5 = scalar_lea.hbm %s862_s9, 128 }
 0x215   :  { %p574_p5 = scmp.ne.s32.totalorder %s862_s9, %s573_s5  ;;  %p577_p6 = scmp.lt.u32.totalorder %s573_s5, %s862_s9 }
 0x217   :  { %p579_p7 = pnand %p577_p6, %p574_p5 }
 0x219   :  { %582 = shalt.err (!%p579_p7)
}
 0x21a   :  { %406 = dma.vmem_to_hbm [thread:$0]  %s404_s22, 128, %s862_s9, [#allocation4]   ;;  %v430_v61 = vld [vmem:[%s860_s7] ss:$0 sm:$0xff] }
 0x21b   :  { %v431_v63 = vld [vmem:[%s861_s8] ss:$0 sm:$0xff]  ;;  %s613_s13 = smov [#allocation5]  }
 0x21c   :  { %s413_s14 = sshll.u32 %s613_s13, 4  ;;  %s414_s14 = int_to_ptr.vmem [resolvable:$true] %s413_s14 }
 0x21d   :  { %s583_s4 = scalar_lea.vmem %s414_s14, 128  ;;  %p588_p9 = scmp.lt.s32.totalorder %s414_s14, %s414_s14 }
 0x21e   :  { %p584_p8 = scmp.ne.s32.totalorder %s414_s14, %s583_s4  ;;  %p589_p10 = scmp.lt.s32.totalorder %s583_s4, %s583_s4 }
 0x220   :  { %p590_p11 = por %p589_p10, %p588_p9 }
 0x222   :  { %p591_p12 = pnand %p590_p11, %p584_p8 }
 0x2e5   :  { %v354_v39 = vpop.f32.mrb[2].mxu1 }
 0x2e6   :  { %v358_v40 = vsel %vm40_vm0, %v354_v39, 0.0  ;;  %v504_v41 = vpop.f32.mrb[3].mxu1 }
 0x2e7   :  { %v359_v42 = vrot.slane %v358_v40, 4 }
 0x2e9   :  { %v360_v43 = vadd.f32 %v359_v42, %v358_v40 }
 0x2eb   :  { %v361_v44 = vrot.slane %v360_v43, 2 }
 0x2ed   :  { %v362_v45 = vadd.f32 %v361_v44, %v360_v43 }
 0x2ef   :  { %v363_v46 = vrot.slane %v362_v45, 1 }
 0x2f1   :  { %v364_v47 = vadd.f32 %v363_v46, %v362_v45 }
 0x2f3   :  { %v365_v48 = vmul.f32 0.125, %v364_v47 }
 0x2f5   :  { %v366_v49 = vsub.f32 %v354_v39, %v365_v48 }
 0x2f7   :  { %v367_v50 = vmul.f32 %v366_v49, %v366_v49 }
 0x2f9   :  { %v368_v51 = vsel %vm40_vm0, %v367_v50, 0.0 }
 0x2fa   :  { %v369_v52 = vrot.slane %v368_v51, 4 }
 0x2fc   :  { %v370_v53 = vadd.f32 %v369_v52, %v368_v51 }
 0x2fe   :  { %v371_v54 = vrot.slane %v370_v53, 2 }
 0x300   :  { %v372_v55 = vadd.f32 %v371_v54, %v370_v53 }
 0x302   :  { %v373_v56 = vrot.slane %v372_v55, 1 }
 0x304   :  { %v374_v57 = vadd.f32 %v373_v56, %v372_v55 }
 0x306   :  { %v375_v58 = vmul.f32 0.125, %v374_v57 }
 0x308   :  { %v376_v59 = vadd.f32 1e-05, %v375_v58 }
 0x30a   :  { %559 = vrsqrt.f32 %v376_v59 }
 0x314   :  { %v560_v60 = vpop.eup %559 }
 0x315   :  { %v378_v62 = vmul.f32 %v560_v60, %v366_v49 }
 0x317   :  { %v386_v0 = vmul.f32 %v430_v61, %v378_v62 }
 0x319   :  { %v394_v1 = vadd.f32 %v431_v63, %v386_v0 }
 0x31b   :  { %v395_v2 = vmax.f32 %v394_v1, 0.0 }
 0x31d   :  { %396 = vst.msk [vmem:[#allocation5] sm:$0xff] %vm40_vm0, %v395_v2 }
 0x31e   :  { %594 = shalt.err (!%p591_p12)
}
 0x31f   :  { %s595_s16 = scalar_lea.hbm %s863_s10, 128 }
 0x320   :  { %p596_p13 = scmp.ne.s32.totalorder %s863_s10, %s595_s16  ;;  %p599_p0 = scmp.lt.u32.totalorder %s595_s16, %s863_s10 }
 0x322   :  { %p601_p1 = pnand %p599_p0, %p596_p13 }
 0x324   :  { %604 = shalt.err (!%p601_p1)
}
 0x325   :  { %416 = dma.vmem_to_hbm [thread:$0]  %s414_s14, 128, %s863_s10, [#allocation6]  }
 0x326   :  { %605 = dma.done.wait [#allocation4], 128  }
 0x327   :  { %606 = vsyncadd [#allocation4], 4294967168 }
 0x328   :  { %607 = dma.done.wait [#allocation6], 128  }
 0x329   :  { %608 = vsyncadd [#allocation6], 4294967168 }
 0x32a   :  { %423 = vsyncpa [#allocation4], 1 }
 0x32b   :  { %424 = vsyncpa [#allocation6], 1 }

</bundles_post_ra>
